<compile_context>
chip_gen: v6e
topology: v6e:2x2x1
jax: 0.10.0
libtpu: 0.0.40
codegen_flags: <defaults>
</compile_context>

<pallas_src>
import jax
import jax.numpy as jnp
from jax.experimental import pallas as pl
from jax.experimental.pallas import tpu as pltpu


_VMEM_LIMIT = 48 * 1024 * 1024          # scoped VMEM limit (safe on v5e/v6e/v7x)
_FUSED_NEED_BYTES = 32 * 1024 * 1024    # max resident bytes allowed for fused path


# ----------------------------------------------------------------------------
# Fused single-pass kernel: one batch's (C, HW) slab resident in VMEM.
# ----------------------------------------------------------------------------
def _fused_cse_kernel(u_ref, w1t_ref, w2_ref, o_ref):
    # u_ref  : (1, C, HW)  input slab for one batch (input dtype)
    # w1t_ref: (C, C2) f32 == (w_squeeze / HW).T   (1/HW folded in)
    # w2_ref : (C, C2) f32 == w_excite
    # o_ref  : (1, C, HW)
    u = u_ref[0]                                                    # (C, HW)
    ssum = jnp.sum(u.astype(jnp.float32), axis=-1, keepdims=True)   # (C, 1) f32
    # squeeze: s[o] = sum_c (w_squeeze[o, c] / HW) * ssum[c]   -> (1, C2)
    s = jnp.sum(w1t_ref[...] * ssum, axis=0, keepdims=True)
    # excite : e[k] = sum_o w_excite[k, o] * s[o]               -> (C, 1)
    e = jnp.sum(w2_ref[...] * s, axis=-1, keepdims=True)
    gate = jax.nn.sigmoid(e)                                        # (C, 1) f32
    # Multiply in the input dtype (bf16 stays bf16 on v6e/v7x VPU).
    o_ref[0] = (u * gate.astype(u.dtype)).astype(o_ref.dtype)


# ----------------------------------------------------------------------------
# Two-pass fallback, stage 1: per-(n, c) spatial sum over the HW grid axis.
# ----------------------------------------------------------------------------
def _make_spatial_sum_kernel(t_hw):
    # Pure-VPU lane-group accumulation when the tile is 128-lane aligned and
    # the unroll stays small; otherwise plain cross-lane reduce per step.
    grouped = (t_hw % 128 == 0) and (t_hw // 128 <= 64)

    def kernel(u_ref, sum_ref, acc_ref):
        # u_ref: (t_nc, t_hw); sum_ref: (t_nc, 1) f32; acc_ref: (t_nc, 128) f32
        @pl.when(pl.program_id(1) == 0)
        def _():
            acc_ref[...] = jnp.zeros_like(acc_ref)

        if grouped:
            u = u_ref[...]
            acc = acc_ref[...]
            for j in range(t_hw // 128):
                acc = acc + u[:, j * 128:(j + 1) * 128].astype(jnp.float32)
            acc_ref[...] = acc
        else:
            acc_ref[:, 0:1] = acc_ref[:, 0:1] + jnp.sum(
                u_ref[...].astype(jnp.float32), axis=-1, keepdims=True)

        @pl.when(pl.program_id(1) == pl.num_programs(1) - 1)
        def _():
            # Single cross-lane (XLU) reduce per output tile.
            sum_ref[...] = jnp.sum(acc_ref[...], axis=-1, keepdims=True)

    return kernel


# ----------------------------------------------------------------------------
# Two-pass fallback, stage 2: broadcast multiply  out = U * gate.
# ----------------------------------------------------------------------------
def _scale_kernel(u_ref, g_ref, o_ref):
    # u_ref: (t_nc, t_hw); g_ref: (t_nc, 1) in U.dtype; o_ref: (t_nc, t_hw)
    o_ref[...] = u_ref[...] * g_ref[...]


# ----------------------------------------------------------------------------
# Tiling helper: largest multiple of `align` dividing `dim`, capped at
# max_tile; falls back to full extent when `dim` is not align-divisible
# (full-extent blocks are always legal under the (8, 128) rule).
# ----------------------------------------------------------------------------
def _pick_tile(dim, align, max_tile):
    if dim % align != 0:
        return dim
    t = max(align, (min(dim, max_tile) // align) * align)
    while dim % t != 0:
        t -= align
    return t


def _cse_fused(u3, w1t, w2):
    N, C, HW = u3.shape
    C2 = w1t.shape[1]
    itemsize = u3.dtype.itemsize
    cost = pl.CostEstimate(
        flops=2 * N * C * HW + 2 * N * C * C2,
        transcendentals=N * C,
        bytes_accessed=2 * N * C * HW * itemsize + 2 * N * 2 * C * C2 * 4,
    )
    return pl.pallas_call(
        _fused_cse_kernel,
        out_shape=jax.ShapeDtypeStruct((N, C, HW), u3.dtype),
        grid_spec=pltpu.PrefetchScalarGridSpec(
            num_scalar_prefetch=0,
            grid=(N,),
            in_specs=[
                pl.BlockSpec((1, C, HW), lambda n: (n, 0, 0)),
                pl.BlockSpec((C, C2), lambda n: (0, 0)),
                pl.BlockSpec((C, C2), lambda n: (0, 0)),
            ],
            out_specs=pl.BlockSpec((1, C, HW), lambda n: (n, 0, 0)),
        ),
        compiler_params=pltpu.CompilerParams(
            # TODO(synk): when N == 1 the fused grid only feeds one v7x
            # TensorCore; the collapsed-N*C two-pass path covers that case.
            dimension_semantics=("parallel",),
            vmem_limit_bytes=_VMEM_LIMIT,
        ),
        cost_estimate=cost,
    )(u3, w1t, w2)


def _cse_two_pass(u2, w1t, w2, N, C, *, max_tnc, max_thw):
    NC, HW = u2.shape
    itemsize = u2.dtype.itemsize

    t_nc = _pick_tile(NC, 8, max_tnc)       # collapsed N*C axis -> sublanes
    t_hw = _pick_tile(HW, 128, max_thw)     # lane-dense spatial tile
    # Keep per-step blocks bounded even if a full-extent tile was forced.
    while t_nc * t_hw * itemsize > 8 * 1024 * 1024 and t_hw % 256 == 0:
        t_hw //= 2
    while t_nc * t_hw * itemsize > 8 * 1024 * 1024 and t_nc % 16 == 0:
        t_nc //= 2
    grid = (NC // t_nc, HW // t_hw)          # reduction axis (HW) last

    # -------- Stage 1: raw spatial sums -> (NC, 1) f32 --------
    sums = pl.pallas_call(
        _make_spatial_sum_kernel(t_hw),
        out_shape=jax.ShapeDtypeStruct((NC, 1), jnp.float32),
        grid_spec=pltpu.PrefetchScalarGridSpec(
            num_scalar_prefetch=0,
            grid=grid,
            in_specs=[pl.BlockSpec((t_nc, t_hw), lambda i, j: (i, j))],
            out_specs=pl.BlockSpec((t_nc, 1), lambda i, j: (i, 0)),
            scratch_shapes=[pltpu.VMEM((t_nc, 128), jnp.float32)],
        ),
        compiler_params=pltpu.CompilerParams(
            dimension_semantics=("parallel", "arbitrary"),
            vmem_limit_bytes=_VMEM_LIMIT,
        ),
        cost_estimate=pl.CostEstimate(
            flops=NC * HW, transcendentals=0,
            bytes_accessed=NC * HW * itemsize + NC * 4),
    )(u2)

    # -------- Gate: two tiny channel matmuls + sigmoid (plain XLA; 1/HW is
    # already folded into w1t so the raw sums feed straight in). --------
    s = jnp.dot(sums.reshape(N, C), w1t, preferred_element_type=jnp.float32)
    e = jnp.dot(s, w2.T, preferred_element_type=jnp.float32)
    gate = jax.nn.sigmoid(e).reshape(NC, 1).astype(u2.dtype)

    # -------- Stage 2: lane-dense broadcast multiply in the input dtype -----
    return pl.pallas_call(
        _scale_kernel,
        out_shape=jax.ShapeDtypeStruct((NC, HW), u2.dtype),
        grid_spec=pltpu.PrefetchScalarGridSpec(
            num_scalar_prefetch=0,
            grid=grid,
            in_specs=[
                pl.BlockSpec((t_nc, t_hw), lambda i, j: (i, j)),
                pl.BlockSpec((t_nc, 1), lambda i, j: (i, 0)),
            ],
            out_specs=pl.BlockSpec((t_nc, t_hw), lambda i, j: (i, j)),
        ),
        compiler_params=pltpu.CompilerParams(
            dimension_semantics=("parallel", "parallel"),
            vmem_limit_bytes=_VMEM_LIMIT,
        ),
        cost_estimate=pl.CostEstimate(
            flops=NC * HW, transcendentals=0,
            bytes_accessed=2 * NC * HW * itemsize + NC * itemsize),
    )(u2, gate)


def cse_layer(U, w_squeeze, w_excite, *, max_tnc=256, max_thw=4096,
              fused_vmem_budget_bytes=_FUSED_NEED_BYTES):
    """U: (N, C, H, W); w_squeeze: (C//2, C); w_excite: (C, C//2)."""
    N, C, H, W = U.shape
    C2 = w_squeeze.shape[0]
    HW = H * W
    itemsize = U.dtype.itemsize

    # Fold the 1/HW mean normalization into the squeeze weight.
    w1t = (w_squeeze.astype(jnp.float32) * (1.0 / HW)).T    # (C, C2)
    w2 = w_excite.astype(jnp.float32)                       # (C, C2)

    # Fused path iff (in + out, double-buffered) + weights + f32 widening temp
    # fit the VMEM budget.
    slab = C * HW * itemsize
    fused_need = 4 * slab + 4 * (2 * C * C2 * 4)
    if itemsize < 4:
        fused_need += C * HW * 4
    if fused_need <= fused_vmem_budget_bytes:
        out = _cse_fused(U.reshape(N, C, HW), w1t, w2)
    else:
        out = _cse_two_pass(U.reshape(N * C, HW), w1t, w2, N, C,
                            max_tnc=max_tnc, max_thw=max_thw)
    return out.reshape(N, C, H, W)


def _reference(U, w1, w2):
    # Pure-JAX reference mirroring the PyTorch semantics.
    z = jnp.mean(U, axis=(2, 3), keepdims=True)            # (N, C, 1, 1)
    z = jnp.einsum("oc,nchw->nohw", w1, z)                  # (N, C//2, 1, 1)
    z = jnp.einsum("oc,nchw->nohw", w2, z)                  # (N, C, 1, 1)
    z = jax.nn.sigmoid(z)
    return U * z


if __name__ == "__main__":
    key = jax.random.PRNGKey(0)
    k_u, k_w1, k_w2 = jax.random.split(key, 3)

    N, C, H, W = 2, 4, 16, 16
    U = jax.random.normal(k_u, (N, C, H, W), dtype=jnp.float32)

    # Conv2d 1x1 (no bias) weights, squeezed to 2-D:
    #   Conv_Squeeze    : (C//2, C, 1, 1) -> (C//2, C)
    #   Conv_Excitation : (C, C//2, 1, 1) -> (C, C//2)
    w_squeeze = jax.random.normal(k_w1, (C // 2, C), dtype=jnp.float32) * 0.5
    w_excite = jax.random.normal(k_w2, (C, C // 2), dtype=jnp.float32) * 0.5

    ref = _reference(U, w_squeeze, w_excite)

    # Primary fused single-pass path.
    out = cse_layer(U, w_squeeze, w_excite)
    jax.block_until_ready(out)
    assert out.shape == (N, C, H, W)
    assert jnp.allclose(out, ref, atol=1e-5, rtol=1e-5), "fused path mismatch"

    # Force the two-pass fallback (large-slab path) and verify it too.
    out2 = cse_layer(U, w_squeeze, w_excite, fused_vmem_budget_bytes=0)
    jax.block_until_ready(out2)
    assert jnp.allclose(out2, ref, atol=1e-5, rtol=1e-5), "two-pass path mismatch"

    print("KERNEL_OK")
</pallas_src>

<mosaic_0001>
module attributes {stable_mosaic.version = 11 : i64} {
  func.func @_fused_cse_kernel(%arg0: i32, %arg1: memref<1x4x256xf32, #tpu.memory_space<vmem>>, %arg2: memref<4x2xf32, #tpu.memory_space<vmem>>, %arg3: memref<4x2xf32, #tpu.memory_space<vmem>>, %arg4: memref<1x4x256xf32, #tpu.memory_space<vmem>>) attributes {dimension_semantics = [#tpu.dimension_semantics<parallel>], iteration_bounds = array<i64: 2>, scalar_prefetch = 0 : i64, scratch_operands = 0 : i64, tpu.core_type = #tpu.core_type<tc>, window_params = [{transform_indices = @transform_0, window_bounds = array<i64: 1, 4, 256>}, {pipeline_mode = #tpu.pipeline_mode<synchronous>, transform_indices = @transform_1, window_bounds = array<i64: 4, 2>}, {pipeline_mode = #tpu.pipeline_mode<synchronous>, transform_indices = @transform_2, window_bounds = array<i64: 4, 2>}, {transform_indices = @transform_3, window_bounds = array<i64: 1, 4, 256>}]} {
    %c0 = arith.constant 0 : index
    %c0_0 = arith.constant 0 : index
    %c0_1 = arith.constant 0 : index
    %0 = vector.load %arg1[%c0, %c0_0, %c0_1] : memref<1x4x256xf32, #tpu.memory_space<vmem>>, vector<1x4x256xf32>
    %1 = vector.shape_cast %0 : vector<1x4x256xf32> to vector<4x256xf32>
    %cst = arith.constant dense<0.000000e+00> : vector<4xf32>
    %2 = vector.multi_reduction <add>, %1, %cst [1] : vector<4x256xf32> to vector<4xf32>
    %3 = vector.shape_cast %2 : vector<4xf32> to vector<4x1xf32>
    %c0_2 = arith.constant 0 : index
    %c0_3 = arith.constant 0 : index
    %4 = vector.load %arg2[%c0_2, %c0_3] : memref<4x2xf32, #tpu.memory_space<vmem>>, vector<4x2xf32>
    %5 = vector.broadcast %3 : vector<4x1xf32> to vector<4x2xf32>
    %6 = arith.mulf %4, %5 : vector<4x2xf32>
    %cst_4 = arith.constant dense<0.000000e+00> : vector<2xf32>
    %7 = vector.multi_reduction <add>, %6, %cst_4 [0] : vector<4x2xf32> to vector<2xf32>
    %8 = vector.shape_cast %7 : vector<2xf32> to vector<1x2xf32>
    %c0_5 = arith.constant 0 : index
    %c0_6 = arith.constant 0 : index
    %9 = vector.load %arg3[%c0_5, %c0_6] : memref<4x2xf32, #tpu.memory_space<vmem>>, vector<4x2xf32>
    %10 = vector.broadcast %8 : vector<1x2xf32> to vector<4x2xf32>
    %11 = arith.mulf %9, %10 : vector<4x2xf32>
    %cst_7 = arith.constant dense<0.000000e+00> : vector<4xf32>
    %12 = vector.multi_reduction <add>, %11, %cst_7 [1] : vector<4x2xf32> to vector<4xf32>
    %13 = vector.shape_cast %12 : vector<4xf32> to vector<4x1xf32>
    %14 = arith.negf %13 : vector<4x1xf32>
    %15 = math.exp %14 : vector<4x1xf32>
    %cst_8 = arith.constant 1.000000e+00 : f32
    %16 = vector.broadcast %cst_8 : f32 to vector<4x1xf32>
    %17 = arith.addf %16, %15 : vector<4x1xf32>
    %18 = arith.divf %16, %17 : vector<4x1xf32>
    %19 = vector.broadcast %18 : vector<4x1xf32> to vector<4x256xf32>
    %20 = arith.mulf %1, %19 : vector<4x256xf32>
    %c0_9 = arith.constant 0 : index
    %c0_10 = arith.constant 0 : index
    %c0_11 = arith.constant 0 : index
    %21 = vector.load %arg4[%c0_9, %c0_10, %c0_11] : memref<1x4x256xf32, #tpu.memory_space<vmem>>, vector<1x4x256xf32>
    %22 = vector.shape_cast %21 : vector<1x4x256xf32> to vector<4x256xf32>
    %23 = vector.shape_cast %20 : vector<4x256xf32> to vector<1x4x256xf32>
    tpu.vector_store %arg4[%c0_9, %c0_10, %c0_11], %23 {strides = array<i32>} : memref<1x4x256xf32, #tpu.memory_space<vmem>>, vector<1x4x256xf32>,
    return
  }
  func.func @transform_0(%arg0: i32) -> (i32, i32, i32) {
    %c0_i32 = arith.constant 0 : i32
    %c0_i32_0 = arith.constant 0 : i32
    %c0_i32_1 = arith.constant 0 : i32
    return %arg0, %c0_i32, %c0_i32_0 : i32, i32, i32
  }
  func.func @transform_1(%arg0: i32) -> (i32, i32) {
    %c0_i32 = arith.constant 0 : i32
    %c0_i32_0 = arith.constant 0 : i32
    %c0_i32_1 = arith.constant 0 : i32
    return %c0_i32, %c0_i32_0 : i32, i32
  }
  func.func @transform_2(%arg0: i32) -> (i32, i32) {
    %c0_i32 = arith.constant 0 : i32
    %c0_i32_0 = arith.constant 0 : i32
    %c0_i32_1 = arith.constant 0 : i32
    return %c0_i32, %c0_i32_0 : i32, i32
  }
  func.func @transform_3(%arg0: i32) -> (i32, i32, i32) {
    %c0_i32 = arith.constant 0 : i32
    %c0_i32_0 = arith.constant 0 : i32
    %c0_i32_1 = arith.constant 0 : i32
    return %arg0, %c0_i32, %c0_i32_0 : i32, i32, i32
  }
}

</mosaic_0001>

<bundles_post_ra>
// kernel: tpu_custom_call.1
= control target key start
LH: loop header
LB: loop body
LE: loop exit
PB: predicated region body
PF: predicated region fallthrough
CT: control target
= control target key end

     0   :  { %8 = vsyncpa [#allocation3], 0  ;;  %s651_s0 = inlined_call_operand.hbm [shape: f32[2,4,256], index: 0, kind: input, shape index: {}]   ;;  %s652_s1 = inlined_call_operand.vmem [shape: f32[4,2], index: 1, kind: input, shape index: {}]   ;;  %s653_s2 = inlined_call_operand.vmem [shape: f32[4,2], index: 2, kind: input, shape index: {}]   ;;  %s654_s3 = inlined_call_operand.hbm [shape: f32[2,4,256], index: 3, kind: output, shape index: {}]  }
   0x1   :  { %10 = vsyncpa [#allocation3 + $0x1], 0 }
   0x2   :  { %11 = vsyncpa [#allocation4], 0 }
   0x3   :  { %13 = vsyncpa [#allocation4 + $0x1], 0  ;;  %s500_s12 = smov 0   ;;  %s502_s13 = smov 0  }
   0x4   :  { %s504_s14 = smov 0   ;;  %s506_s15 = smov 0  }
   0x5 LB: > { %s521_s16 = sadd.s32 4294967295, %s475_s15   ;;  %s314_s17 = sadd.s32 4294967294, %s475_s15   ;;  %s475_s15 = sphi %s506_s15, %s671_s15   ;;  %s471_s14 = sphi %s504_s14, %s670_s14   ;;  %s467_s13 = sphi %s502_s13, %s669_s13   ;;  %s463_s12 = sphi %s500_s12, %s668_s12  }
   0x6   : > { %s525_s18 = sadd.s32 1, %s475_s15   ;;  %s26_s19 = sadd.s32 1, %s471_s14 }
   0x7   : > { %s23_s20 = ssub.s32 %s475_s15, %s525_s18  ;;  %p33_p0 = scmp.ne.s32.totalorder %s471_s14, %s467_s13 }
   0x8   : > { %p24_p1 = scmp.eq.s32.totalorder %s23_s20, 0  ;;  %p34_p2 = scmp.eq.s32.totalorder %s475_s15, 0 }
   0x9   : > { %p39_p3 = scmp.ne.s32.totalorder %s467_s13, %s463_s12  ;;  %p40_p4 = scmp.eq.s32.totalorder %s521_s16, 0 }
   0xa   : > { %s537_s21 = scalar_select %p24_p1, %s471_s14, %s26_s19  }
   0xb   : > { %p539_p5 = por %p34_p2, %p33_p0  ;;  %p543_p6 = por %p40_p4, %p39_p3 }
   0xc   : > { %p105_p7 = scmp.eq.s32.totalorder %s521_s16, 1  ;;  %p111_p8 = scmp.eq.s32.totalorder %s314_s17, 1 }
   0xd   : > { %s658_s23 = scalar_select %p543_p6, 1, 0 }
   0xe   : > { %p343_p10 = scmp.lt.s32.totalorder %s475_s15, 2  ;;  %p550_p11 = por %p105_p7, %p33_p0 }
   0xf   : > { %p554_p12 = por %p111_p8, %p39_p3  ;;  %s137_s26 = sand.u32 1, %s471_s14  }
  0x10   : > { %s659_s24 = scalar_select %p550_p11, 1, 0 }
  0x11   : > { %s660_s25 = scalar_select %p554_p12, 1, 0 }
  0x12   : > { %s329_s27 = sshll.u32 %s475_s15, 7  ;;  %s317_s28 = sshll.u32 %s137_s26, 3 }
  0x13   : > { %s563_s4 = scalar_lea.hbm %s651_s0, %s329_s27  ;;  %s141_s5 = scalar_lea.vmem [#allocation2], %s317_s28 }
  0x14   : > { %s149_s6 = sshll.u32 %s141_s5, 4  ;;  %p567_p13 = pnand %p343_p10, %p539_p5  ;;  %s571_s6 = int_to_ptr.vmem [resolvable:$true] %s149_s6 }
  0x15   : > { %s138_s8 = scalar_lea.sflag [#allocation3], %s137_s26  ;;  %s383_s9 = scalar_lea.hbm %s563_s4, 128 }
  0x16   : > { %p384_p2 = scmp.ne.s32.totalorder %s563_s4, %s383_s9  ;;  %p385_p3 = pneg %p567_p13 }
  0x17   : > { %s388_s17 = scalar_lea.hbm %s651_s0, 256  ;;  %p389_p5 = scmp.lt.s32.totalorder %s563_s4, %s651_s0 }
  0x18   : > { %p386_p4 = pnand %p385_p3, %p384_p2  ;;  %p390_p8 = scmp.lt.s32.totalorder %s388_s17, %s383_s9 }
  0x1a   : > { %p387_p7 = pneg %p386_p4  ;;  %p391_p10 = por %p390_p8, %p389_p5 }
  0x1c   : > { %p392_p9 = pnand %p391_p10, %p387_p7 }
  0x1e   : > { %395 = shalt.err (!%p392_p9)
}
  0x1f   : > { %s396_s22 = scalar_lea.vmem %s571_s6, 128  ;;  %s477_s26 = smov [#allocation2]  }
  0x20   : > { %p397_p0 = scmp.ne.s32.totalorder %s571_s6, %s396_s22  ;;  %s401_s27 = sshll.u32 %s477_s26, 4  ;;  %s402_s27 = int_to_ptr.vmem [resolvable:$false] %s401_s27 }
  0x21   : > { %s403_s28 = scalar_lea.vmem %s402_s27, 256  ;;  %p404_p4 = scmp.lt.s32.totalorder %s571_s6, %s402_s27 }
  0x22   : > { %p399_p1 = pnand %p397_p0, %p385_p3  ;;  %p405_p12 = scmp.lt.s32.totalorder %s403_s28, %s396_s22 }
  0x24   : > { %p400_p2 = pneg %p399_p1  ;;  %p406_p11 = por %p405_p12, %p404_p4 }
  0x26   : > { %p407_p6 = pnand %p406_p11, %p400_p2 }
  0x28   : > { %410 = shalt.err (!%p407_p6)
}
  0x29   : > { %338 = dma.hbm_to_vmem [thread:$0]  (!%p567_p13), %s563_s4, 128, %s571_s6, %s138_s8  }
  0x2a   : > { %p662_p9 = scmp.lt.s32.totalorder %s475_s15, 3  ;;  %p663_p7 = scmp.ge.s32.totalorder %s475_s15, 1 }
  0x2c   : > { %p155_p0 = pnand %p663_p7, %p662_p9 }
  0x2d   : > { %s598_s29 = sand.u32 (!%p155_p0), 1, %s467_s13   ;;  %p664_p6 = scmp.ne.s32.totalorder (!%p155_p0), %s658_s23, 0 }
  0x2e   : > { %158 = sbr.rel (%p155_p0) target bundleno = 401 (0x191), region = 32  ;;  %s321_s30 = sshll.u32 (!%p155_p0), %s598_s29, 3 }
  0x2f   : > { %s161_s5 = scalar_lea.sflag (!%p155_p0), [#allocation3], %s598_s29  ;;  %s164_s7 = scalar_lea.vmem (!%p155_p0), [#allocation2], %s321_s30 }
  0x33   : > { %454 = dma.done.wait (%p664_p6), %s161_s5, 128  }
  0x34   : > { %456 = vsyncadd (%p664_p6), %s161_s5, 4294967168  ;;  %vm191_vm0 = vcmask 1043456   ;;  %v187_v0 = vld [vmem:[%s164_s7] sm:$0xff]  ;;  %vm199_vm1 = vcmask 11264   ;;  %v478_v22 = vmov 839922192   ;;  %v222_v24 = vlaneseq }
  0x35   : > { %v189_v1 = vcombine.high %v187_v0, %v187_v0  ;;  %v192_v2 = vsel %vm191_vm0, %v187_v0, 0.0  ;;  %v197_v5 = vld [vmem:[%s652_s1] sm:$0xf]  ;;  %v220_v23 = vunpack.c.l.s4 %v478_v22  ;;  %s330_s9 = sshll.u32 %s521_s16, 7  ;;  %s186_s10 = scalar_lea.vmem [#allocation5], %s321_s30 }
  0x36   : > { %v207_v14 = vld [vmem:[%s653_s2] sm:$0xf]  ;;  %v223_v26 = vshrl.u32 %v222_v24, 7  ;;  %s244_s11 = sshll.u32 %s186_s10, 4  ;;  %s242_s20 = scalar_lea.hbm %s654_s3, %s330_s9  ;;  %s245_s11 = int_to_ptr.vmem [resolvable:$true] %s244_s11 }
  0x37   : > { %v193_v3 = vsel %vm191_vm0, %v189_v1, 0.0  ;;  %v221_v25 = vunpack.c.0.s8 %v220_v23  ;;  %s230_s22 = scalar_lea.sflag [#allocation4], %s598_s29  ;;  %s411_s26 = scalar_lea.vmem %s245_s11, 128 }
  0x38   : > { %v194_v4 = vadd.f32 %v193_v3, %v192_v2  ;;  %p412_p11 = scmp.ne.s32.totalorder %s245_s11, %s411_s26  ;;  %p665_p12 = scmp.ne.s32.totalorder %s659_s24, 0 }
  0x39   : > { %v224_v27 = vsub.s32 %v221_v25, %v223_v26  ;;  %s479_s27 = smov [#allocation5]  }
  0x3a   : > { %195 = vadd.xlane.f32.xlu0 %v194_v4  ;;  %p413_p13 = pnand %p412_p11, %p665_p12  ;;  %s415_s28 = sshll.u32 %s479_s27, 4  ;;  %s416_s28 = int_to_ptr.vmem [resolvable:$false] %s415_s28 }
  0x3b   : > { %s417_s16 = scalar_lea.vmem %s416_s28, 256  ;;  %p418_p3 = scmp.lt.s32.totalorder %s245_s11, %s416_s28 }
  0x3c   : > { %p414_p1 = pneg %p413_p13  ;;  %p419_p5 = scmp.lt.s32.totalorder %s417_s16, %s411_s26 }
  0x3e   : > { %p420_p8 = por %p419_p5, %p418_p3 }
  0x40   : > { %p421_p10 = pnand %p420_p8, %p414_p1 }
  0xc3   : > { %v196_v6 = vpop.xlane.xlu0 %195 }
  0xc4   : > { %v198_v7 = vmul.f32 %v197_v5, %v196_v6 }
  0xc6   : > { %v200_v8 = vsel %vm199_vm1, %v198_v7, 0.0 }
  0xc7   : > { %v201_v9 = vrot.slane %v200_v8, 4 }
  0xc9   : > { %v202_v10 = vadd.f32 %v201_v9, %v200_v8 }
  0xcb   : > { %v203_v11 = vrot.slane %v202_v10, 2 }
  0xcd   : > { %v204_v12 = vadd.f32 %v203_v11, %v202_v10 }
  0xcf   : > { %v205_v13 = vrot.slane %v204_v12, 1 }
  0xd1   : > { %v206_v15 = vadd.f32 %v205_v13, %v204_v12 }
  0xd3   : > { %v208_v16 = vmul.f32 %v207_v14, %v206_v15 }
  0xd5   : > { %v209_v17 = vsel %vm199_vm1, %v208_v16, 0.0 }
  0xd6   : > { %210 = vadd.xlane.f32.xlu0 %v209_v17 }
 0x15f   : > { %v211_v18 = vpop.xlane.xlu0 %210 }
 0x160   : > { %v323_v19 = vmul.f32 -1.442695, %v211_v18 }
 0x162   : > { %379 = vpow2.f32 %v323_v19 }
 0x16f   : > { %v380_v20 = vpop.eup %379 }
 0x170   : > { %v215_v21 = vadd.f32 1.0, %v380_v20 }
 0x172   : > { %381 = vrcp.f32 %v215_v21 }
 0x17f   : > { %v382_v28 = vpop.eup %381 }
 0x180   : > { %v225_v29 = vrot.slane %v382_v28, %v224_v27 }
 0x182   : > { %v227_v30 = vmul.f32 %v225_v29, %v187_v0 }
 0x184   : > { %228 = vst [vmem:[%s186_s10] sm:$0xff] %v227_v30 }
 0x185   : > { %424 = shalt.err (!%p421_p10)
}
 0x186   : > { %s425_s30 = scalar_lea.hbm %s242_s20, 128  ;;  %s429_s7 = scalar_lea.hbm %s654_s3, 256 }
 0x187   : > { %p426_p2 = scmp.ne.s32.totalorder %s242_s20, %s425_s30  ;;  %p430_p7 = scmp.lt.s32.totalorder %s242_s20, %s654_s3 }
 0x188   : > { %p431_p0 = scmp.lt.s32.totalorder %s429_s7, %s425_s30 }
 0x189   : > { %p427_p4 = pnand %p426_p2, %p665_p12 }
 0x18a   : > { %p432_p6 = por %p431_p0, %p430_p7 }
 0x18b   : > { %p428_p9 = pneg %p427_p4 }
 0x18d   : > { %p433_p11 = pnand %p432_p6, %p428_p9 }
 0x18f   : > { %436 = shalt.err (!%p433_p11)
}
 0x190   : > { %333 = dma.vmem_to_hbm [thread:$0]  (%p665_p12), %s245_s11, 128, %s242_s20, %s230_s22  }
 0x191 PF: > { %s256_s23 = sand.u32 1, %s463_s12   ;;  %p666_p13 = scmp.ne.s32.totalorder %s660_s25, 0 }
 0x192   : > { %p667_p1 = scmp.ge.s32.totalorder %s475_s15, 2  ;;  %s257_s8 = scalar_lea.sflag [#allocation4], %s256_s23 }
 0x194   : > { %p340_p3 = pnand %p667_p1, %p666_p13 }
 0x196   : > { %p341_p5 = pneg %p340_p3 }
 0x198   : > { %458 = dma.done.wait (%p341_p5), %s257_s8, 128  }
 0x199   : > { %460 = vsyncadd (%p341_p5), %s257_s8, 4294967168  ;;  %p16_p8 = scmp.ge.s32.totalorder %s525_s18, 4   ;;  %s668_s12 = smov %s467_s13 }
 0x19a   : > { %s669_s13 = smov %s471_s14  ;;  %s670_s14 = smov %s537_s21 }
 0x19b   : > { %s671_s15 = smov %s525_s18  ;;  %18 = sbr.rel (!%p16_p8) target bundleno = 5 (0x5), region = 77 }
 0x1a0   :  { %262 = vsyncpa [#allocation3], 1 }
 0x1a1   :  { %264 = vsyncpa [#allocation3 + $0x1], 1 }
 0x1a2   :  { %265 = vsyncpa [#allocation4], 1 }
 0x1a3   :  { %267 = vsyncpa [#allocation4 + $0x1], 1 }

</bundles_post_ra>
